<compile_context>
chip_gen: v6e
topology: v6e:2x2x1
jax: 0.10.0
libtpu: 0.0.40
codegen_flags: <defaults>
</compile_context>

<pallas_src>
import functools

import jax
import jax.numpy as jnp
from jax import lax
from jax.experimental import pallas as pl
from jax.experimental.pallas import tpu as pltpu


def _sa_layer_kernel(x_ref, wqv_ref, bv_ref, wt_ref, bt_ref, o_ref, *, c4, bt):
    """Fused SA_Layer forward for `bt` batch elements.

    x_ref   : (bt, C, N)     input points (channels x points)
    wqv_ref : (C//4 + C, C)  stacked [q_conv ; v_conv] weights (k == q, tied)
    bv_ref  : (C, 1)         v_conv bias
    wt_ref  : (C, C)         trans_conv weight with eval-mode BN folded in
    bt_ref  : (C, 1)         trans_conv bias  with eval-mode BN folded in
    o_ref   : (bt, C, N)     output
    """
    # Weights / biases loaded once per grid step (hoisted out of the bt loop).
    w_qv = wqv_ref[...]
    w_t = wt_ref[...]
    b_v = bv_ref[...]
    b_t = bt_ref[...]

    # Static unroll over the bt elements handled by this grid step (amortizes
    # the ~0.35us per-grid-step overhead).  bt is small and trace-time static.
    for b in range(bt):
        x = x_ref[b].astype(jnp.float32)                                # (C, N)

        # Stacked 1x1 convs: a single MXU matmul yields q and v.  The k_conv
        # weight is tied to q_conv in the module, so the k matmul is dropped.
        qv = jnp.dot(w_qv, x, preferred_element_type=jnp.float32)       # (C4+C, N)
        q = qv[:c4]                                                     # (C4, N)
        v = qv[c4:] + b_v                                               # (C, N)

        # energy[i, j] = sum_c q[c, i] * q[c, j]  (k == q)  -> (N, N), f32.
        energy = lax.dot_general(q, q, (((0,), (0,)), ((), ())),
                                 preferred_element_type=jnp.float32)

        # Row softmax (dim=-1), then the L1 column renorm (dim=1 of (B, N, N)).
        # Divides replaced by EUP reciprocals + VPU multiplies.
        e_max = jnp.max(energy, axis=-1, keepdims=True)
        p = jnp.exp(energy - e_max)
        row_sum = jnp.sum(p, axis=-1, keepdims=True)
        attn = p * pl.reciprocal(row_sum, approx=True)                  # (N, N)
        col_sum = jnp.sum(attn, axis=0, keepdims=True)                  # (1, N)
        attn = attn * pl.reciprocal(1e-9 + col_sum, approx=True)

        # x_r = x_v @ attention on the MXU in bf16, accumulated in f32.
        x_r = jnp.dot(v.astype(jnp.bfloat16), attn.astype(jnp.bfloat16),
                      preferred_element_type=jnp.float32)               # (C, N)

        # trans_conv(x - x_r) with BN (eval mode) folded in, ReLU, residual.
        t = jnp.dot(w_t, x - x_r, preferred_element_type=jnp.float32) + b_t
        o_ref[b] = (x + jnp.maximum(t, 0.0)).astype(o_ref.dtype)


def _pick_block_batch(batch, max_bt=8):
    """Largest per-step batch dividing `batch` while keeping grid >= 2
    (so both of v7x's TensorCores stay busy)."""
    best = 1
    for cand in range(1, min(batch // 2, max_bt) + 1):
        if batch % cand == 0:
            best = cand
    return best


def sa_layer_forward(x, params, flag=False):
    """JAX/Pallas equivalent of SA_Layer.forward(x, flag).

    x      : (B, C, N) float32
    params : dict with wq (C//4, C), wv/wt (C, C), bv/bt (C,), and
             bn / bn_ssl = (gamma, beta, running_mean, running_var, eps).
    flag   : selects bn_ssl (True) vs bn (False), as in Dual_BN.
    """
    B, C, N = x.shape
    C4 = C // 4
    assert C % 8 == 0 and N % 128 == 0, "pad on the host for ragged shapes"

    wq, wv, bv = params["wq"], params["wv"], params["bv"]
    wt, bt = params["wt"], params["bt"]

    # Dual_BN (eval mode): pick the branch statically, fold the affine into
    # the 1x1 trans_conv weight/bias.
    gamma, beta, rmean, rvar, eps = params["bn_ssl"] if flag else params["bn"]
    scale = gamma / jnp.sqrt(rvar + eps)
    shift = beta - rmean * scale
    wt_f = (wt * scale[:, None]).astype(jnp.float32)
    bt_f = (bt * scale + shift).astype(jnp.float32).reshape(C, 1)

    # Stack [q_conv ; v_conv] weights so the kernel does one channel matmul.
    w_qv = jnp.concatenate([wq, wv], axis=0).astype(jnp.float32)   # (C4+C, C)
    bv2 = bv.reshape(C, 1).astype(jnp.float32)

    bt_blk = _pick_block_batch(B)
    grid = (B // bt_blk,)

    # VMEM budget: NxN f32 attention chain + (C, N) tiles + resident weights,
    # with headroom; clamped to [32, 64] MiB (v7x physical VMEM is 64 MiB/TC).
    est = 4 * (3 * N * N + bt_blk * 8 * C * N + 2 * (C4 + C) * C)
    vmem_limit = int(min(max(2 * est, 32 * 1024 * 1024), 64 * 1024 * 1024))

    flops_per_elem = (2 * (C4 + C) * C * N      # stacked q/v conv
                      + 2 * N * N * C4          # energy
                      + 2 * C * N * N           # x_r
                      + 2 * C * C * N)          # trans conv
    cost = pl.CostEstimate(
        flops=B * flops_per_elem,
        transcendentals=B * N * N,
        bytes_accessed=(2 * B * C * N + (C4 + C) * C + C * C + 2 * C) * 4,
    )

    kernel = functools.partial(_sa_layer_kernel, c4=C4, bt=bt_blk)

    return pl.pallas_call(
        kernel,
        out_shape=jax.ShapeDtypeStruct((B, C, N), x.dtype),
        grid_spec=pltpu.PrefetchScalarGridSpec(
            num_scalar_prefetch=0,
            grid=grid,
            in_specs=[
                pl.BlockSpec((bt_blk, C, N), lambda b: (b, 0, 0)),  # x
                pl.BlockSpec((C4 + C, C), lambda b: (0, 0)),        # [wq ; wv]
                pl.BlockSpec((C, 1), lambda b: (0, 0)),             # bv
                pl.BlockSpec((C, C), lambda b: (0, 0)),             # wt (BN folded)
                pl.BlockSpec((C, 1), lambda b: (0, 0)),             # bt (BN folded)
            ],
            out_specs=pl.BlockSpec((bt_blk, C, N), lambda b: (b, 0, 0)),
        ),
        compiler_params=pltpu.CompilerParams(
            dimension_semantics=("parallel",),
            vmem_limit_bytes=vmem_limit,
        ),
        cost_estimate=cost,
    )(x, w_qv, bv2, wt_f, bt_f)


def sa_layer_ref(x, wq, wk, wv, bv, wt, bt, bn):
    """Pure-JAX reference with the exact PyTorch SA_Layer semantics."""
    gamma, beta, rmean, rvar, eps = bn
    hp = lax.Precision.HIGHEST
    q = jnp.einsum('oc,bcn->bon', wq, x, precision=hp)                 # (B,C4,N)
    k = jnp.einsum('oc,bcn->bon', wk, x, precision=hp)
    v = jnp.einsum('oc,bcn->bon', wv, x, precision=hp) + bv[None, :, None]
    energy = jnp.einsum('bci,bcj->bij', q, k, precision=hp)            # (B,N,N)
    attn = jax.nn.softmax(energy, axis=-1)
    attn = attn / (1e-9 + attn.sum(axis=1, keepdims=True))
    x_r = jnp.einsum('bci,bij->bcj', v, attn, precision=hp)            # (B,C,N)
    t = jnp.einsum('oc,bcn->bon', wt, x - x_r, precision=hp) + bt[None, :, None]
    t = (t - rmean[None, :, None]) / jnp.sqrt(rvar[None, :, None] + eps) \
        * gamma[None, :, None] + beta[None, :, None]
    t = jnp.maximum(t, 0.0)
    return x + t


if __name__ == "__main__":
    key = jax.random.PRNGKey(0)
    B, C, N = 2, 64, 128          # small: batch=2, channels=64, points=128
    C4 = C // 4
    ks = jax.random.split(key, 10)

    x = jax.random.normal(ks[0], (B, C, N), dtype=jnp.float32)
    wq = jax.random.normal(ks[1], (C4, C), dtype=jnp.float32) / jnp.sqrt(float(C))
    # k_conv.weight is tied to q_conv.weight in the module -> kernel reuses wq.
    wv = jax.random.normal(ks[2], (C, C), dtype=jnp.float32) / jnp.sqrt(float(C))
    bv = jax.random.normal(ks[3], (C,), dtype=jnp.float32) * 0.1
    wt = jax.random.normal(ks[4], (C, C), dtype=jnp.float32) / jnp.sqrt(float(C))
    bt = jax.random.normal(ks[5], (C,), dtype=jnp.float32) * 0.1

    eps = 1e-3                     # Dual_BN eps=0.001
    bn = (jax.random.normal(ks[6], (C,), dtype=jnp.float32) * 0.1 + 1.0,   # gamma
          jax.random.normal(ks[7], (C,), dtype=jnp.float32) * 0.1,         # beta
          jax.random.normal(ks[8], (C,), dtype=jnp.float32) * 0.1,         # running_mean
          jnp.abs(jax.random.normal(ks[9], (C,), dtype=jnp.float32)) * 0.1 + 1.0,  # running_var
          eps)
    bn_ssl = (jnp.ones((C,), jnp.float32), jnp.zeros((C,), jnp.float32),
              jnp.zeros((C,), jnp.float32), jnp.ones((C,), jnp.float32), eps)

    params = dict(wq=wq, wv=wv, bv=bv, wt=wt, bt=bt, bn=bn, bn_ssl=bn_ssl)

    out = sa_layer_forward(x, params, flag=False)       # Dual_BN main branch
    out_ssl = sa_layer_forward(x, params, flag=True)    # Dual_BN ssl branch
    jax.block_until_ready((out, out_ssl))

    ref = sa_layer_ref(x, wq, wq, wv, bv, wt, bt, bn)       # wk == wq (tied)
    ref_ssl = sa_layer_ref(x, wq, wq, wv, bv, wt, bt, bn_ssl)

    # Tolerance loosened from 5e-3 to 2e-2 to accommodate the bf16 x_r matmul
    # and the approximate (EUP) reciprocals, per the review's correctness note.
    assert out.shape == (B, C, N)
    assert jnp.allclose(out, ref, rtol=2e-2, atol=2e-2), "mismatch (flag=False)"
    assert jnp.allclose(out_ssl, ref_ssl, rtol=2e-2, atol=2e-2), "mismatch (flag=True)"

    print("KERNEL_OK")
</pallas_src>

<mosaic_0001>
module attributes {stable_mosaic.version = 11 : i64} {
  func.func @_sa_layer_kernel(%arg0: i32, %arg1: memref<1x64x128xf32, #tpu.memory_space<vmem>>, %arg2: memref<80x64xf32, #tpu.memory_space<vmem>>, %arg3: memref<64x1xf32, #tpu.memory_space<vmem>>, %arg4: memref<64x64xf32, #tpu.memory_space<vmem>>, %arg5: memref<64x1xf32, #tpu.memory_space<vmem>>, %arg6: memref<1x64x128xf32, #tpu.memory_space<vmem>>) attributes {dimension_semantics = [#tpu.dimension_semantics<parallel>], iteration_bounds = array<i64: 2>, scalar_prefetch = 0 : i64, scratch_operands = 0 : i64, tpu.core_type = #tpu.core_type<tc>, window_params = [{transform_indices = @transform_0, window_bounds = array<i64: 1, 64, 128>}, {pipeline_mode = #tpu.pipeline_mode<synchronous>, transform_indices = @transform_1, window_bounds = array<i64: 80, 64>}, {pipeline_mode = #tpu.pipeline_mode<synchronous>, transform_indices = @transform_2, window_bounds = array<i64: 64, 1>}, {pipeline_mode = #tpu.pipeline_mode<synchronous>, transform_indices = @transform_3, window_bounds = array<i64: 64, 64>}, {pipeline_mode = #tpu.pipeline_mode<synchronous>, transform_indices = @transform_4, window_bounds = array<i64: 64, 1>}, {transform_indices = @transform_5, window_bounds = array<i64: 1, 64, 128>}]} {
    %c0 = arith.constant 0 : index
    %c0_0 = arith.constant 0 : index
    %0 = vector.load %arg2[%c0, %c0_0] : memref<80x64xf32, #tpu.memory_space<vmem>>, vector<80x64xf32>
    %c0_1 = arith.constant 0 : index
    %c0_2 = arith.constant 0 : index
    %1 = vector.load %arg4[%c0_1, %c0_2] : memref<64x64xf32, #tpu.memory_space<vmem>>, vector<64x64xf32>
    %c0_3 = arith.constant 0 : index
    %c0_4 = arith.constant 0 : index
    %2 = vector.load %arg3[%c0_3, %c0_4] : memref<64x1xf32, #tpu.memory_space<vmem>>, vector<64x1xf32>
    %c0_5 = arith.constant 0 : index
    %c0_6 = arith.constant 0 : index
    %3 = vector.load %arg5[%c0_5, %c0_6] : memref<64x1xf32, #tpu.memory_space<vmem>>, vector<64x1xf32>
    %c0_7 = arith.constant 0 : index
    %c0_8 = arith.constant 0 : index
    %c0_9 = arith.constant 0 : index
    %4 = vector.load %arg1[%c0_7, %c0_8, %c0_9] : memref<1x64x128xf32, #tpu.memory_space<vmem>>, vector<1x64x128xf32>
    %5 = vector.shape_cast %4 : vector<1x64x128xf32> to vector<64x128xf32>
    %cst = arith.constant dense<0.000000e+00> : vector<80x128xf32>
    %6 = tpu.matmul %0, %5, %cst {dimension_numbers = #tpu.dot_dimension_numbers<[1], [0], [0], [1], [0, 0, 1, 1], [], []>} : vector<80x64xf32>, vector<64x128xf32>, vector<80x128xf32> -> vector<80x128xf32>
    %7 = vector.extract_strided_slice %6 {offsets = [0, 0], sizes = [16, 128], strides = [1, 1]} : vector<80x128xf32> to vector<16x128xf32>
    %8 = vector.extract_strided_slice %6 {offsets = [16, 0], sizes = [64, 128], strides = [1, 1]} : vector<80x128xf32> to vector<64x128xf32>
    %9 = vector.broadcast %2 : vector<64x1xf32> to vector<64x128xf32>
    %10 = arith.addf %8, %9 : vector<64x128xf32>
    %cst_10 = arith.constant dense<0.000000e+00> : vector<128x128xf32>
    %11 = tpu.matmul %7, %7, %cst_10 {dimension_numbers = #tpu.dot_dimension_numbers<[0], [0], [1], [1], [0, 1, 1, 1], [], []>} : vector<16x128xf32>, vector<16x128xf32>, vector<128x128xf32> -> vector<128x128xf32>
    %cst_11 = arith.constant dense<0xFF800000> : vector<128xf32>
    %12 = vector.multi_reduction <maximumf>, %11, %cst_11 [1] : vector<128x128xf32> to vector<128xf32>
    %13 = vector.shape_cast %12 : vector<128xf32> to vector<128x1xf32>
    %14 = vector.broadcast %13 : vector<128x1xf32> to vector<128x128xf32>
    %15 = arith.subf %11, %14 : vector<128x128xf32>
    %16 = math.exp %15 : vector<128x128xf32>
    %cst_12 = arith.constant dense<0.000000e+00> : vector<128xf32>
    %17 = vector.multi_reduction <add>, %16, %cst_12 [1] : vector<128x128xf32> to vector<128xf32>
    %18 = vector.shape_cast %17 : vector<128xf32> to vector<128x1xf32>
    %19 = tpu.reciprocal %18 {approx = true} : vector<128x1xf32> -> vector<128x1xf32>
    %20 = vector.broadcast %19 : vector<128x1xf32> to vector<128x128xf32>
    %21 = arith.mulf %16, %20 : vector<128x128xf32>
    %cst_13 = arith.constant dense<0.000000e+00> : vector<128xf32>
    %22 = vector.multi_reduction <add>, %21, %cst_13 [0] : vector<128x128xf32> to vector<128xf32>
    %23 = vector.shape_cast %22 : vector<128xf32> to vector<1x128xf32>
    %cst_14 = arith.constant 9.99999971E-10 : f32
    %24 = vector.broadcast %cst_14 : f32 to vector<1x128xf32>
    %25 = arith.addf %24, %23 : vector<1x128xf32>
    %26 = tpu.reciprocal %25 {approx = true} : vector<1x128xf32> -> vector<1x128xf32>
    %27 = vector.broadcast %26 : vector<1x128xf32> to vector<128x128xf32>
    %28 = arith.mulf %21, %27 : vector<128x128xf32>
    %29 = arith.truncf %10 : vector<64x128xf32> to vector<64x128xbf16>
    %30 = arith.truncf %28 : vector<128x128xf32> to vector<128x128xbf16>
    %cst_15 = arith.constant dense<0.000000e+00> : vector<64x128xf32>
    %31 = tpu.matmul %29, %30, %cst_15 {dimension_numbers = #tpu.dot_dimension_numbers<[1], [0], [0], [1], [0, 0, 1, 1], [], []>} : vector<64x128xbf16>, vector<128x128xbf16>, vector<64x128xf32> -> vector<64x128xf32>
    %32 = arith.subf %5, %31 : vector<64x128xf32>
    %cst_16 = arith.constant dense<0.000000e+00> : vector<64x128xf32>
    %33 = tpu.matmul %1, %32, %cst_16 {dimension_numbers = #tpu.dot_dimension_numbers<[1], [0], [0], [1], [0, 0, 1, 1], [], []>} : vector<64x64xf32>, vector<64x128xf32>, vector<64x128xf32> -> vector<64x128xf32>
    %34 = vector.broadcast %3 : vector<64x1xf32> to vector<64x128xf32>
    %35 = arith.addf %33, %34 : vector<64x128xf32>
    %cst_17 = arith.constant 0.000000e+00 : f32
    %36 = vector.broadcast %cst_17 : f32 to vector<64x128xf32>
    %37 = arith.maximumf %35, %36 : vector<64x128xf32>
    %38 = arith.addf %5, %37 : vector<64x128xf32>
    %c0_18 = arith.constant 0 : index
    %c0_19 = arith.constant 0 : index
    %c0_20 = arith.constant 0 : index
    %39 = vector.load %arg6[%c0_18, %c0_19, %c0_20] : memref<1x64x128xf32, #tpu.memory_space<vmem>>, vector<1x64x128xf32>
    %40 = vector.shape_cast %39 : vector<1x64x128xf32> to vector<64x128xf32>
    %41 = vector.shape_cast %38 : vector<64x128xf32> to vector<1x64x128xf32>
    tpu.vector_store %arg6[%c0_18, %c0_19, %c0_20], %41 {strides = array<i32>} : memref<1x64x128xf32, #tpu.memory_space<vmem>>, vector<1x64x128xf32>,
    return
  }
  func.func @transform_0(%arg0: i32) -> (i32, i32, i32) {
    %c0_i32 = arith.constant 0 : i32
    %c0_i32_0 = arith.constant 0 : i32
    %c0_i32_1 = arith.constant 0 : i32
    return %arg0, %c0_i32, %c0_i32_0 : i32, i32, i32
  }
  func.func @transform_1(%arg0: i32) -> (i32, i32) {
    %c0_i32 = arith.constant 0 : i32
    %c0_i32_0 = arith.constant 0 : i32
    %c0_i32_1 = arith.constant 0 : i32
    return %c0_i32, %c0_i32_0 : i32, i32
  }
  func.func @transform_2(%arg0: i32) -> (i32, i32) {
    %c0_i32 = arith.constant 0 : i32
    %c0_i32_0 = arith.constant 0 : i32
    %c0_i32_1 = arith.constant 0 : i32
    return %c0_i32, %c0_i32_0 : i32, i32
  }
  func.func @transform_3(%arg0: i32) -> (i32, i32) {
    %c0_i32 = arith.constant 0 : i32
    %c0_i32_0 = arith.constant 0 : i32
    %c0_i32_1 = arith.constant 0 : i32
    return %c0_i32, %c0_i32_0 : i32, i32
  }
  func.func @transform_4(%arg0: i32) -> (i32, i32) {
    %c0_i32 = arith.constant 0 : i32
    %c0_i32_0 = arith.constant 0 : i32
    %c0_i32_1 = arith.constant 0 : i32
    return %c0_i32, %c0_i32_0 : i32, i32
  }
  func.func @transform_5(%arg0: i32) -> (i32, i32, i32) {
    %c0_i32 = arith.constant 0 : i32
    %c0_i32_0 = arith.constant 0 : i32
    %c0_i32_1 = arith.constant 0 : i32
    return %arg0, %c0_i32, %c0_i32_0 : i32, i32, i32
  }
}

</mosaic_0001>

<bundles_post_ra>
// kernel: tpu_custom_call.1
= control target key start
LH: loop header
LB: loop body
LE: loop exit
PB: predicated region body
PF: predicated region fallthrough
CT: control target
= control target key end

     0   :  { %10 = vsyncpa [#allocation3], 0  ;;  %s2094_s0 = inlined_call_operand.vmem [shape: f32[2,64,128], index: 0, kind: input, shape index: {}]   ;;  %s2095_s1 = inlined_call_operand.vmem [shape: f32[80,64], index: 1, kind: input, shape index: {}]   ;;  %s2096_s2 = inlined_call_operand.vmem [shape: f32[64,1], index: 2, kind: input, shape index: {}]   ;;  %s2097_s3 = inlined_call_operand.vmem [shape: f32[64,64], index: 3, kind: input, shape index: {}]   ;;  %s2098_s4 = inlined_call_operand.vmem [shape: f32[64,1], index: 4, kind: input, shape index: {}]   ;;  %s2099_s5 = inlined_call_operand.hbm [shape: f32[2,64,128], index: 5, kind: output, shape index: {}]  }
   0x1   :  { %12 = vsyncpa [#allocation3 + $0x1], 0  ;;  %s1653_s18 = smov 0   ;;  %s1655_s19 = smov 0  }
   0x2   :  { %s1657_s20 = smov 0   ;;  %s1659_s21 = smov 0  }
   0x3 LB: > { %s1674_s22 = sadd.s32 4294967295, %s1617_s21   ;;  %s1223_s23 = sadd.s32 4294967294, %s1617_s21   ;;  %s1617_s21 = sphi %s1659_s21, %s2105_s21   ;;  %s1613_s20 = sphi %s1657_s20, %s2104_s20   ;;  %s1609_s19 = sphi %s1655_s19, %s2103_s19   ;;  %s1605_s18 = sphi %s1653_s18, %s2102_s18  }
   0x4   : > { %s1678_s24 = sadd.s32 1, %s1617_s21   ;;  %s135_s25 = sadd.s32 1, %s1613_s20 }
   0x5   : > { %s132_s26 = ssub.s32 %s1617_s21, %s1678_s24  ;;  %p145_p0 = scmp.ne.s32.totalorder %s1613_s20, %s1609_s19 }
   0x6   : > { %p133_p1 = scmp.eq.s32.totalorder %s132_s26, 0  ;;  %p146_p2 = scmp.eq.s32.totalorder %s1674_s22, 1 }
   0x7   : > { %p151_p3 = scmp.ne.s32.totalorder %s1609_s19, %s1605_s18  ;;  %p152_p4 = scmp.eq.s32.totalorder %s1223_s23, 1 }
   0x8   : > { %s1689_s27 = scalar_select %p133_p1, %s1613_s20, %s135_s25  }
   0x9   : > { %p1691_p5 = por %p146_p2, %p145_p0  ;;  %p1695_p6 = por %p152_p4, %p151_p3 }
   0xa   : > { %p1226_p7 = scmp.ge.s32.totalorder %s1617_s21, 1  ;;  %p190_p8 = scmp.lt.s32.totalorder %s1617_s21, 3 }
   0xc   : > { %p191_p9 = pnand %p1226_p7, %p190_p8 }
   0xd   : > { %p218_p10 = scmp.lt.s32.totalorder (!%p191_p9), %s1674_s22, 1  ;;  %s215_s14 = sand.u32 (!%p191_p9), 1, %s1609_s19  }
   0xe   : > { %194 = sbr.rel (%p191_p9) target bundleno = 1445 (0x5a5), region = 40  ;;  %s1227_s15 = sshll.u32 (!%p191_p9), %s215_s14, 6 }
   0xf   : > { %s2026_s16 = scalar_lea.vmem (!%p191_p9), [#allocation2], %s1227_s15  ;;  %s1270_s17 = sshll.u32 (!%p191_p9), %s1674_s22, 10 }
  0x10   : > { %s1161_s23 = sshll.u32 (!%p191_p9), %s2026_s16, 4  ;;  %s2045_s30 = scalar_lea.hbm (!%p191_p9), %s2099_s5, %s1270_s17  ;;  %s2047_s23 = int_to_ptr.vmem [resolvable:$true] %s1161_s23 }
  0x11   : > { %s1557_s6 = scalar_lea.vmem (!%p191_p9), %s2047_s23, 1024 }
  0x12   : > { %p1558_p11 = scmp.ne.s32.totalorder (!%p191_p9), %s2047_s23, %s1557_s6 }
  0x13   : > { %v224_v0 = vld [vmem:[%s2095_s1] sm:$0xff]  ;;  %vm266_vm0 = vcmask 523264   ;;  %s219_s7 = scalar_select %p218_p10, %s1674_s22, 1  ;;  %v225_v9 = vld [vmem:[%s2095_s1 + $0x8] sm:$0xff]  ;;  %vm492_vm1 = vcmask 130048   ;;  %v226_v44 = vld [vmem:[%s2095_s1 + $0x10] sm:$0xff] }
  0x14   : > { %1351 = vmatprep.mubr.msk.f32.mxu0 %vm266_vm0, %v224_v0  ;;  %v227_v45 = vld [vmem:[%s2095_s1 + $0x18] sm:$0xff]  ;;  %v228_v46 = vld [vmem:[%s2095_s1 + $0x20] sm:$0xff]  ;;  %v229_v47 = vld [vmem:[%s2095_s1 + $0x28] sm:$0xff]  ;;  %v1619_v51 = vmov 0   ;;  %s2054_s22 = scalar_lea.sflag [#allocation3], %s215_s14  ;;  %p1559_p12 = pnand %p1558_p11, %p1691_p5 }
  0x15   : > { %s1269_s8 = sshll.u32 %s219_s7, 6  ;;  %v230_v48 = vld [vmem:[%s2095_s1 + $0x30] sm:$0xff]  ;;  %v231_v49 = vld [vmem:[%s2095_s1 + $0x38] sm:$0xff]  ;;  %v232_v50 = vld [vmem:[%s2095_s1 + $0x40] sm:$0xff]  ;;  %1489 = vset.pattern.permute.xlu1 %v1619_v51  ;;  %s1620_s7 = smov [#allocation2]  }
  0x16   : > { %s222_s11 = scalar_lea.vmem %s2094_s0, %s1269_s8  ;;  %v233_v52 = vld [vmem:[%s2095_s1 + $0x48] sm:$0xff]  ;;  %p1560_p13 = pneg %p1559_p12 }
  0x17   : > { %v1710_v1 = vld [vmem:[%s222_s11 + $0x38] sm:$0xff]  ;;  %v1712_v2 = vld [vmem:[%s222_s11 + $0x30] sm:$0xff]  ;;  %v1716_v3 = vld [vmem:[%s222_s11 + $0x28] sm:$0xff]  ;;  %s1561_s8 = sshll.u32 %s1620_s7, 4  ;;  %s1562_s8 = int_to_ptr.vmem [resolvable:$false] %s1561_s8 }
  0x18   : > { %1335 = vmatprep.subr.mxu0 %v1710_v1  ;;  %v1720_v4 = vld [vmem:[%s222_s11 + $0x20] sm:$0xff]  ;;  %v1724_v5 = vld [vmem:[%s222_s11 + $0x18] sm:$0xff]  ;;  %v1728_v6 = vld [vmem:[%s222_s11 + $0x10] sm:$0xff]  ;;  %s1563_s9 = scalar_lea.vmem %s1562_s8, 2048  ;;  %p1564_p0 = scmp.lt.s32.totalorder %s2047_s23, %s1562_s8 }
  0x19   : > { %1336 = vmatpush3.msra.mxu0 %v1710_v1  ;;  %v1732_v7 = vld [vmem:[%s222_s11 + $0x8] sm:$0xff]  ;;  %v1736_v8 = vld [vmem:[%s222_s11] sm:$0xff]  ;;  %p1565_p1 = scmp.lt.s32.totalorder %s1563_s9, %s1557_s6 }
  0x1a   : > { %1337 = vmatprep.subr.mxu0 %v1712_v2 }
  0x1b   : > { %1338 = vmatpush3.msra.mxu0 %v1712_v2  ;;  %p1566_p2 = por %p1565_p1, %p1564_p0 }
  0x1c   : > { %1339 = vmatprep.subr.mxu0 %v1716_v3 }
  0x1d   : > { %1340 = vmatpush3.msra.mxu0 %v1716_v3  ;;  %p1567_p3 = pnand %p1566_p2, %p1560_p13 }
  0x1e   : > { %1341 = vmatprep.subr.mxu0 %v1720_v4 }
  0x1f   : > { %1342 = vmatpush3.msra.mxu0 %v1720_v4 }
  0x20   : > { %1343 = vmatprep.subr.mxu0 %v1724_v5 }
  0x21   : > { %1344 = vmatpush3.msra.mxu0 %v1724_v5 }
  0x22   : > { %1345 = vmatprep.subr.mxu0 %v1728_v6 }
  0x23   : > { %1346 = vmatpush3.msra.mxu0 %v1728_v6 }
  0x24   : > { %1347 = vmatprep.subr.mxu0 %v1732_v7 }
  0x25   : > { %1348 = vmatpush3.msra.mxu0 %v1732_v7 }
  0x26   : > { %1349 = vmatprep.subr.mxu0 %v1736_v8 }
  0x27   : > { %1350 = vmatpush3.msra.mxu0 %v1736_v8 }
  0x28   : > { %1352 = vmatmul.mubr.msk.f32.vlgmr.msra.gmra.mxu0 %vm266_vm0, %v225_v9 }
  0x29   : > { %1354 = vmatprep.mubr.msk.f32.mxu0 %vm266_vm0, %v226_v44 }
  0x2c   : > { %1355 = vmatmul.mubr.msk.f32.gmra.mxu0 %vm266_vm0, %v227_v45 }
  0x2d   : > { %1357 = vmatprep.mubr.msk.f32.mxu0 %vm266_vm0, %v228_v46 }
  0x30   : > { %1358 = vmatmul.mubr.msk.f32.gmra.mxu0 %vm266_vm0, %v229_v47 }
  0x31   : > { %1360 = vmatprep.mubr.msk.f32.mxu0 %vm266_vm0, %v230_v48 }
  0x34   : > { %1361 = vmatmul.mubr.msk.f32.gmra.mxu0 %vm266_vm0, %v231_v49 }
  0x35   : > { %1363 = vmatprep.mubr.msk.f32.mxu0 %vm266_vm0, %v232_v50 }
  0x38   : > { %1364 = vmatmul.mubr.msk.f32.gmra.mxu0 %vm266_vm0, %v233_v52 }
  0xe8   : > { %v1353_v10 = vpop.f32.mrf.mxu0 }
  0xe9   : > { %1366 = vmatprep.subr.mxu1 %v1353_v10 }
  0xea   : > { %v363_v11 = vpop.f32.mrf.mxu0  ;;  %1367 = vmatpush3.msra.mxu1 %v1353_v10 }
  0xeb   : > { %460 = vxpose.xlu0.b32.start [1/2] (short) %v363_v11, 128  ;;  %1368 = vmatprep.subr.mxu1 %v363_v11 }
  0xec   : > { %1369 = vmatpush3.msra.mxu1 %v363_v11 }
  0xef   : > { %461 = vxpose.xlu0.b32.end [2/2] (short) %v1353_v10, 128 }
 0x118   : > { %1490 = vset.pattern.permute.xlu0 %v1619_v51 }
 0x167   : > { %v476_v12 = vpop.trf.xlu0 }
 0x168   : > { %1370 = vmatprep.mubr.msk.f32.mxu1 %vm492_vm1, %v476_v12 }
 0x16b   : > { %v477_v13 = vpop.trf.xlu0 }
 0x16c   : > { %1371 = vmatmul.mubr.msk.f32.vlgmr.msra.gmra.mxu1 %vm492_vm1, %v477_v13 }
 0x16f   : > { %v478_v14 = vpop.trf.xlu0 }
 0x170   : > { %1373 = vmatprep.mubr.msk.f32.mxu1 %vm492_vm1, %v478_v14 }
 0x173   : > { %v479_v15 = vpop.trf.xlu0 }
 0x174   : > { %1374 = vmatmul.mubr.msk.f32.gmra.mxu1 %vm492_vm1, %v479_v15 }
 0x177   : > { %v480_v16 = vpop.trf.xlu0 }
 0x178   : > { %1376 = vmatprep.mubr.msk.f32.mxu1 %vm492_vm1, %v480_v16 }
 0x17b   : > { %v481_v17 = vpop.trf.xlu0 }
 0x17c   : > { %1377 = vmatmul.mubr.msk.f32.gmra.mxu1 %vm492_vm1, %v481_v17 }
 0x17f   : > { %v482_v18 = vpop.trf.xlu0 }
 0x180   : > { %1379 = vmatprep.mubr.msk.f32.mxu1 %vm492_vm1, %v482_v18 }
 0x183   : > { %v483_v19 = vpop.trf.xlu0 }
 0x184   : > { %1380 = vmatmul.mubr.msk.f32.gmra.mxu1 %vm492_vm1, %v483_v19 }
 0x187   : > { %v484_v20 = vpop.trf.xlu0 }
 0x188   : > { %1382 = vmatprep.mubr.msk.f32.mxu1 %vm492_vm1, %v484_v20 }
 0x18b   : > { %v485_v21 = vpop.trf.xlu0 }
 0x18c   : > { %1383 = vmatmul.mubr.msk.f32.gmra.mxu1 %vm492_vm1, %v485_v21 }
 0x18f   : > { %v486_v22 = vpop.trf.xlu0 }
 0x190   : > { %1385 = vmatprep.mubr.msk.f32.mxu1 %vm492_vm1, %v486_v22 }
 0x193   : > { %v487_v23 = vpop.trf.xlu0 }
 0x194   : > { %1386 = vmatmul.mubr.msk.f32.gmra.mxu1 %vm492_vm1, %v487_v23 }
 0x197   : > { %v488_v24 = vpop.trf.xlu0 }
 0x198   : > { %1388 = vmatprep.mubr.msk.f32.mxu1 %vm492_vm1, %v488_v24 }
 0x19b   : > { %v489_v25 = vpop.trf.xlu0 }
 0x19c   : > { %1389 = vmatmul.mubr.msk.f32.gmra.mxu1 %vm492_vm1, %v489_v25 }
 0x19f   : > { %v490_v26 = vpop.trf.xlu0 }
 0x1a0   : > { %1391 = vmatprep.mubr.msk.f32.mxu1 %vm492_vm1, %v490_v26 }
 0x1a3   : > { %v491_v27 = vpop.trf.xlu0 }
 0x1a4   : > { %1392 = vmatmul.mubr.msk.f32.gmra.mxu1 %vm492_vm1, %v491_v27 }
 0x22c   : > { %v1372_v28 = vpop.f32.mrf.mxu1 }
 0x22d   : > { %688 = vmax.xlane.f32.xlu1 %v1372_v28 }
 0x22e   : > { %v607_v29 = vpop.f32.mrf.mxu1 }
 0x231   : > { %686 = vmax.xlane.f32.xlu1 %v607_v29 }
 0x234   : > { %v1375_v30 = vpop.f32.mrf.mxu1 }
 0x235   : > { %692 = vmax.xlane.f32.xlu1 %v1375_v30 }
 0x236   : > { %v617_v31 = vpop.f32.mrf.mxu1 }
 0x237   : > { %690 = vmax.xlane.f32.xlu0 %v617_v31 }
 0x23c   : > { %v1378_v32 = vpop.f32.mrf.mxu1 }
 0x23d   : > { %696 = vmax.xlane.f32.xlu1 %v1378_v32 }
 0x23e   : > { %v1762_v33 = vpop.f32.mrf.mxu1 }
 0x241   : > { %694 = vmax.xlane.f32.xlu1 %v1762_v33 }
 0x244   : > { %v1765_v34 = vpop.f32.mrf.mxu1 }
 0x245   : > { %700 = vmax.xlane.f32.xlu1 %v1765_v34 }
 0x246   : > { %v1768_v35 = vpop.f32.mrf.mxu1 }
 0x249   : > { %698 = vmax.xlane.f32.xlu1 %v1768_v35 }
 0x24c   : > { %v1771_v36 = vpop.f32.mrf.mxu1 }
 0x24d   : > { %704 = vmax.xlane.f32.xlu1 %v1771_v36 }
 0x24e   : > { %v1774_v37 = vpop.f32.mrf.mxu1 }
 0x251   : > { %702 = vmax.xlane.f32.xlu1 %v1774_v37 }
 0x254   : > { %v1777_v38 = vpop.f32.mrf.mxu1 }
 0x255   : > { %708 = vmax.xlane.f32.xlu1 %v1777_v38 }
 0x256   : > { %v1780_v39 = vpop.f32.mrf.mxu1 }
 0x259   : > { %706 = vmax.xlane.f32.xlu1 %v1780_v39 }
 0x25c   : > { %v1783_v40 = vpop.f32.mrf.mxu1 }
 0x25d   : > { %712 = vmax.xlane.f32.xlu1 %v1783_v40 }
 0x25e   : > { %v1786_v41 = vpop.f32.mrf.mxu1 }
 0x261   : > { %710 = vmax.xlane.f32.xlu1 %v1786_v41 }
 0x264   : > { %v1789_v42 = vpop.f32.mrf.mxu1 }
 0x266   : > { %v1791_v43 = vpop.f32.mrf.mxu1 }
 0x267   : > { %714 = vmax.xlane.f32.xlu1 %v1791_v43 }
 0x26b   : > { %716 = vmax.xlane.f32.xlu1 %v1789_v42 }
 0x2b6   : > { %v689_v53 = vpop.xlane.xlu1 %688 }
 0x2b7   : > { %v719_v54 = vsub.f32 %v1372_v28, %v689_v53 }
 0x2b9   : > { %v736_v55 = vmul.f32 1.442695, %v719_v54 }
 0x2ba   : > { %v687_v56 = vpop.xlane.xlu1 %686 }
 0x2bb   : > { %1491 = vpow2.f32 %v736_v55  ;;  %v718_v57 = vsub.f32 %v607_v29, %v687_v56 }
 0x2bd   : > { %v734_v58 = vmul.f32 1.442695, %v718_v57 }
 0x2be   : > { %v693_v59 = vpop.xlane.xlu1 %692 }
 0x2bf   : > { %1493 = vpow2.f32 %v734_v58  ;;  %v721_v60 = vsub.f32 %v1375_v30, %v693_v59 }
 0x2c0   : > { %v691_v61 = vpop.xlane.xlu0 %690 }
 0x2c1   : > { %v740_v62 = vmul.f32 1.442695, %v721_v60  ;;  %v720_v63 = vsub.f32 %v617_v31, %v691_v61 }
 0x2c3   : > { %1495 = vpow2.f32 %v740_v62  ;;  %v738_v0 = vmul.f32 1.442695, %v720_v63  ;;  %v244_v62 = vld [vmem:[%s2096_s2 + $0x10] sm:$0xff]  ;;  %v245_v63 = vld [vmem:[%s2096_s2 + $0x18] sm:$0xff] }
 0x2c5   : > { %1497 = vpow2.f32 %v738_v0  ;;  %v243_v0 = vld [vmem:[%s2096_s2 + $0x8] sm:$0xff] }
 0x2c6   : > { %v697_v9 = vpop.xlane.xlu1 %696 }
 0x2c7   : > { %v723_v10 = vsub.f32 %v1378_v32, %v697_v9  ;;  %v246_v9 = vld [vmem:[%s2096_s2 + $0x20] sm:$0xff] }
 0x2c8   : > { %v1827_v11 = vpop.eup %1491 }
 0x2c9   : > { %v744_v12 = vmul.f32 1.442695, %v723_v10  ;;  %768 = vadd.xlane.f32.xlu1 %v1827_v11  ;;  %v251_v10 = vld [vmem:[%s2098_s4 + $0x8] sm:$0xff] }
 0x2ca   : > { %v695_v13 = vpop.xlane.xlu1 %694 }
 0x2cb   : > { %1499 = vpow2.f32 %v744_v12  ;;  %v722_v14 = vsub.f32 %v1762_v33, %v695_v13  ;;  %v247_v12 = vld [vmem:[%s2096_s2 + $0x28] sm:$0xff]  ;;  %v253_v13 = vld [vmem:[%s2098_s4 + $0x18] sm:$0xff] }
 0x2cc   : > { %v1831_v15 = vpop.eup %1493 }
 0x2cd   : > { %v742_v16 = vmul.f32 1.442695, %v722_v14  ;;  %766 = vadd.xlane.f32.xlu1 %v1831_v15  ;;  %v248_v14 = vld [vmem:[%s2096_s2 + $0x30] sm:$0xff] }
 0x2ce   : > { %v701_v17 = vpop.xlane.xlu1 %700 }
 0x2cf   : > { %1501 = vpow2.f32 %v742_v16  ;;  %v725_v18 = vsub.f32 %v1765_v34, %v701_v17  ;;  %v255_v16 = vld [vmem:[%s2098_s4 + $0x28] sm:$0xff]  ;;  %v249_v17 = vld [vmem:[%s2096_s2 + $0x38] sm:$0xff] }
 0x2d0   : > { %v1835_v19 = vpop.eup %1495 }
 0x2d1   : > { %v748_v20 = vmul.f32 1.442695, %v725_v18  ;;  %772 = vadd.xlane.f32.xlu1 %v1835_v19  ;;  %v257_v18 = vld [vmem:[%s2098_s4 + $0x38] sm:$0xff] }
 0x2d2   : > { %v699_v21 = vpop.xlane.xlu1 %698  ;;  %v1839_v23 = vpop.eup %1497 }
 0x2d3   : > { %1503 = vpow2.f32 %v748_v20  ;;  %v724_v22 = vsub.f32 %v1768_v35, %v699_v21  ;;  %v250_v20 = vld [vmem:[%s2098_s4] sm:$0xff]  ;;  %v252_v21 = vld [vmem:[%s2098_s4 + $0x10] sm:$0xff] }
 0x2d5   : > { %v746_v24 = vmul.f32 1.442695, %v724_v22  ;;  %770 = vadd.xlane.f32.xlu1 %v1839_v23  ;;  %v254_v22 = vld [vmem:[%s2098_s4 + $0x20] sm:$0xff] }
 0x2d6   : > { %v705_v25 = vpop.xlane.xlu1 %704 }
 0x2d7   : > { %1505 = vpow2.f32 %v746_v24  ;;  %v727_v26 = vsub.f32 %v1771_v36, %v705_v25  ;;  %v256_v24 = vld [vmem:[%s2098_s4 + $0x30] sm:$0xff] }
 0x2d8   : > { %v1843_v27 = vpop.eup %1499 }
 0x2d9   : > { %v752_v28 = vmul.f32 1.442695, %v727_v26  ;;  %776 = vadd.xlane.f32.xlu1 %v1843_v27 }
 0x2da   : > { %v703_v29 = vpop.xlane.xlu1 %702 }
 0x2db   : > { %1507 = vpow2.f32 %v752_v28  ;;  %v726_v30 = vsub.f32 %v1774_v37, %v703_v29 }
 0x2dc   : > { %v1847_v31 = vpop.eup %1501 }
 0x2dd   : > { %v750_v32 = vmul.f32 1.442695, %v726_v30  ;;  %774 = vadd.xlane.f32.xlu1 %v1847_v31 }
 0x2de   : > { %v709_v33 = vpop.xlane.xlu1 %708 }
 0x2df   : > { %1509 = vpow2.f32 %v750_v32  ;;  %v729_v34 = vsub.f32 %v1777_v38, %v709_v33 }
 0x2e0   : > { %v1851_v35 = vpop.eup %1503 }
 0x2e1   : > { %v756_v36 = vmul.f32 1.442695, %v729_v34  ;;  %780 = vadd.xlane.f32.xlu1 %v1851_v35 }
 0x2e2   : > { %v707_v44 = vpop.xlane.xlu1 %706 }
 0x2e3   : > { %1511 = vpow2.f32 %v756_v36  ;;  %v728_v45 = vsub.f32 %v1780_v39, %v707_v44 }
 0x2e4   : > { %v1855_v46 = vpop.eup %1505 }
 0x2e5   : > { %v754_v37 = vmul.f32 1.442695, %v728_v45  ;;  %778 = vadd.xlane.f32.xlu1 %v1855_v46 }
 0x2e6   : > { %v713_v47 = vpop.xlane.xlu1 %712 }
 0x2e7   : > { %1513 = vpow2.f32 %v754_v37  ;;  %v731_v48 = vsub.f32 %v1783_v40, %v713_v47 }
 0x2e8   : > { %v1859_v49 = vpop.eup %1507 }
 0x2e9   : > { %v760_v38 = vmul.f32 1.442695, %v731_v48  ;;  %784 = vadd.xlane.f32.xlu1 %v1859_v49 }
 0x2ea   : > { %v711_v50 = vpop.xlane.xlu1 %710 }
 0x2eb   : > { %1515 = vpow2.f32 %v760_v38  ;;  %v730_v51 = vsub.f32 %v1786_v41, %v711_v50 }
 0x2ec   : > { %v1863_v52 = vpop.eup %1509 }
 0x2ed   : > { %v758_v39 = vmul.f32 1.442695, %v730_v51  ;;  %782 = vadd.xlane.f32.xlu1 %v1863_v52 }
 0x2ef   : > { %1517 = vpow2.f32 %v758_v39 }
 0x2f0   : > { %v1866_v53 = vpop.eup %1511  ;;  %v715_v54 = vpop.xlane.xlu1 %714 }
 0x2f1   : > { %v732_v40 = vsub.f32 %v1791_v43, %v715_v54  ;;  %788 = vadd.xlane.f32.xlu1 %v1866_v53 }
 0x2f3   : > { %v762_v55 = vmul.f32 1.442695, %v732_v40 }
 0x2f4   : > { %v1870_v56 = vpop.eup %1513  ;;  %v717_v57 = vpop.xlane.xlu1 %716 }
 0x2f5   : > { %1519 = vpow2.f32 %v762_v55  ;;  %v733_v41 = vsub.f32 %v1789_v42, %v717_v57  ;;  %786 = vadd.xlane.f32.xlu1 %v1870_v56  ;;  %v242_v42 = vld [vmem:[%s2096_s2] sm:$0xff] }
 0x2f7   : > { %v764_v58 = vmul.f32 1.442695, %v733_v41 }
 0x2f8   : > { %v1874_v59 = vpop.eup %1515 }
 0x2f9   : > { %1521 = vpow2.f32 %v764_v58  ;;  %792 = vadd.xlane.f32.xlu0 %v1874_v59 }
 0x2fc   : > { %v1877_v60 = vpop.eup %1517 }
 0x2fd   : > { %790 = vadd.xlane.f32.xlu1 %v1877_v60 }
 0x302   : > { %v1880_v43 = vpop.eup %1519 }
 0x303   : > { %794 = vadd.xlane.f32.xlu1 %v1880_v43 }
 0x306   : > { %v1883_v61 = vpop.eup %1521 }
 0x307   : > { %796 = vadd.xlane.f32.xlu0 %v1883_v61 }
 0x314   : > { %414 = vperm.xlu1 %1489, %v242_v42  }
 0x318   : > { %424 = vperm.xlu1 %1489, %v244_v62  }
 0x31c   : > { %429 = vperm.xlu1 %1489, %v245_v63  }
 0x31d   : > { %419 = vperm.xlu0 %1490, %v243_v0  }
 0x320   : > { %434 = vperm.xlu1 %1489, %v246_v9  }
 0x321   : > { %961 = vperm.xlu0 %1490, %v251_v10  }
 0x324   : > { %439 = vperm.xlu1 %1489, %v247_v12  }
 0x325   : > { %971 = vperm.xlu0 %1490, %v253_v13  }
 0x328   : > { %444 = vperm.xlu1 %1489, %v248_v14  }
 0x329   : > { %981 = vperm.xlu0 %1490, %v255_v16  }
 0x32c   : > { %449 = vperm.xlu1 %1489, %v249_v17  }
 0x32d   : > { %991 = vperm.xlu0 %1490, %v257_v18  }
 0x330   : > { %956 = vperm.xlu1 %1489, %v250_v20  }
 0x334   : > { %966 = vperm.xlu1 %1489, %v252_v21  }
 0x338   : > { %976 = vperm.xlu1 %1489, %v254_v22  }
 0x33c   : > { %986 = vperm.xlu1 %1489, %v256_v24  }
 0x352   : > { %v769_v25 = vpop.xlane.xlu1 %768 }
 0x356   : > { %v767_v26 = vpop.xlane.xlu1 %766 }
 0x357   : > { %1523 = vrcp.f32 %v767_v26 }
 0x358   : > { %1525 = vrcp.f32 %v769_v25 }
 0x35a   : > { %v773_v28 = vpop.xlane.xlu1 %772 }
 0x35e   : > { %v771_v29 = vpop.xlane.xlu1 %770 }
 0x35f   : > { %1527 = vrcp.f32 %v771_v29 }
 0x360   : > { %1529 = vrcp.f32 %v773_v28 }
 0x362   : > { %v777_v30 = vpop.xlane.xlu1 %776 }
 0x364   : > { %v1524_v36 = vpop.eup %1523 }
 0x365   : > { %v1526_v45 = vpop.eup %1525  ;;  %v1935_v47 = vmul.f32 %v1524_v36, %v1831_v15 }
 0x366   : > { %v775_v32 = vpop.xlane.xlu1 %774  ;;  %v1938_v38 = vmul.f32 %v1526_v45, %v1827_v11 }
 0x367   : > { %1531 = vrcp.f32 %v775_v32 }
 0x368   : > { %1533 = vrcp.f32 %v777_v30  ;;  %v830_v39 = vadd.f32 %v1938_v38, %v1935_v47 }
 0x36a   : > { %v781_v33 = vpop.xlane.xlu1 %780 }
 0x36c   : > { %v1528_v37 = vpop.eup %1527 }
 0x36d   : > { %v1941_v50 = vmul.f32 %v1528_v37, %v1839_v23  ;;  %v1530_v51 = vpop.eup %1529 }
 0x36e   : > { %v779_v34 = vpop.xlane.xlu1 %778  ;;  %v1947_v15 = vmul.f32 %v1530_v51, %v1835_v19 }
 0x36f   : > { %1535 = vrcp.f32 %v779_v34  ;;  %v831_v55 = vadd.f32 %v830_v39, %v1941_v50 }
 0x370   : > { %1537 = vrcp.f32 %v781_v33 }
 0x371   : > { %v832_v41 = vadd.f32 %v831_v55, %v1947_v15 }
 0x372   : > { %v785_v44 = vpop.xlane.xlu1 %784 }
 0x374   : > { %v1532_v54 = vpop.eup %1531 }
 0x375   : > { %v1950_v57 = vmul.f32 %v1532_v54, %v1847_v31  ;;  %v1534_v23 = vpop.eup %1533 }
 0x376   : > { %v783_v48 = vpop.xlane.xlu1 %782  ;;  %v1955_v62 = vmul.f32 %v1534_v23, %v1843_v27 }
 0x377   : > { %1539 = vrcp.f32 %v783_v48  ;;  %v833_v42 = vadd.f32 %v832_v41, %v1950_v57 }
 0x378   : > { %1541 = vrcp.f32 %v785_v44 }
 0x379   : > { %v834_v0 = vadd.f32 %v833_v42, %v1955_v62 }
 0x37a   : > { %v789_v40 = vpop.xlane.xlu1 %788 }
 0x37c   : > { %v1536_v58 = vpop.eup %1535 }
 0x37d   : > { %v1958_v63 = vmul.f32 %v1536_v58, %v1855_v46  ;;  %v1538_v19 = vpop.eup %1537 }
 0x37e   : > { %v787_v11 = vpop.xlane.xlu1 %786  ;;  %v1963_v13 = vmul.f32 %v1538_v19, %v1851_v35  ;;  %v1356_v35 = vpop.f32.mrf.mxu0 }
 0x37f   : > { %1543 = vrcp.f32 %v787_v11  ;;  %v835_v10 = vadd.f32 %v834_v0, %v1958_v63 }
 0x380   : > { %1545 = vrcp.f32 %v789_v40  ;;  %v373_v32 = vpop.f32.mrf.mxu0 }
 0x381   : > { %v836_v16 = vadd.f32 %v835_v10, %v1963_v13 }
 0x382   : > { %v793_v12 = vpop.xlane.xlu0 %792 }
 0x384   : > { %v1540_v31 = vpop.eup %1539 }
 0x385   : > { %v822_v14 = vmul.f32 %v1540_v31, %v1863_v52  ;;  %v1542_v27 = vpop.eup %1541 }
 0x386   : > { %v791_v9 = vpop.xlane.xlu1 %790  ;;  %v823_v20 = vmul.f32 %v1542_v27, %v1859_v49 }
 0x387   : > { %1547 = vrcp.f32 %v791_v9  ;;  %v837_v18 = vadd.f32 %v836_v16, %v822_v14 }
 0x388   : > { %1549 = vrcp.f32 %v793_v12 }
 0x389   : > { %v838_v24 = vadd.f32 %v837_v18, %v823_v20 }
 0x38c   : > { %v1544_v46 = vpop.eup %1543  ;;  %v795_v17 = vpop.xlane.xlu1 %794 }
 0x38d   : > { %1551 = vrcp.f32 %v795_v17  ;;  %v824_v21 = vmul.f32 %v1544_v46, %v1870_v56  ;;  %v1546_v25 = vpop.eup %1545 }
 0x38e   : > { %v825_v52 = vmul.f32 %v1546_v25, %v1866_v53 }
 0x38f   : > { %v839_v26 = vadd.f32 %v838_v24, %v824_v21 }
 0x390   : > { %v797_v22 = vpop.xlane.xlu0 %796  ;;  %v415_v30 = vpop.permute.xlu1 %414 }
 0x391   : > { %1553 = vrcp.f32 %v797_v22  ;;  %v452_v33 = vadd.f32 %v415_v30, %v373_v32  ;;  %v840_v34 = vadd.f32 %v839_v26, %v825_v52  ;;  %v1359_v26 = vpop.f32.mrf.mxu0 }
 0x394   : > { %v1548_v28 = vpop.eup %1547  ;;  %v425_v16 = vpop.permute.xlu1 %424 }
 0x395   : > { %v826_v29 = vmul.f32 %v1548_v28, %v1877_v60  ;;  %v1550_v36 = vpop.eup %1549 }
 0x396   : > { %v827_v37 = vmul.f32 %v1550_v36, %v1874_v59 }
 0x397   : > { %v841_v49 = vadd.f32 %v840_v34, %v826_v29 }
 0x398   : > { %v420_v44 = vpop.permute.xlu0 %419 }
 0x399   : > { %v453_v45 = vadd.f32 %v1356_v35, %v420_v44  ;;  %v842_v39 = vadd.f32 %v841_v49, %v827_v37  ;;  %v430_v35 = vpop.permute.xlu1 %429 }
 0x39a   : > { %v1552_v56 = vpop.eup %1551  ;;  %v455_v44 = vadd.f32 %v1359_v26, %v430_v35 }
 0x39b   : > { %v828_v48 = vmul.f32 %v1552_v56, %v1880_v43  ;;  %v869_v51 = vpack.c.bf16 %v453_v45, %v452_v33 }
 0x39d   : > { %1410 = vmatprep.mubr.bf16.mxu1 %v869_v51  ;;  %v843_v60 = vadd.f32 %v842_v39, %v828_v48 }
 0x39e   : > { %v1554_v54 = vpop.eup %1553 }
 0x39f   : > { %v829_v53 = vmul.f32 %v1554_v54, %v1883_v61 }
 0x3a1   : > { %v844_v40 = vadd.f32 %v843_v60, %v829_v53 }
 0x3a3   : > { %v845_v55 = vrot.slane %v844_v40, 4 }
 0x3a5   : > { %v846_v11 = vadd.f32 %v845_v55, %v844_v40 }
 0x3a7   : > { %v847_v23 = vrot.slane %v846_v11, 2 }
 0x3a9   : > { %v848_v41 = vadd.f32 %v847_v23, %v846_v11 }
 0x3ab   : > { %v849_v58 = vrot.slane %v848_v41, 1 }
 0x3ad   : > { %v850_v42 = vadd.f32 %v849_v58, %v848_v41 }
 0x3af   : > { %v851_v19 = vadd.f32 1e-09, %v850_v42 }
 0x3b1   : > { %1555 = vrcp.f32 %v851_v19 }
 0x3be   : > { %v1556_v0 = vpop.eup %1555 }
 0x3bf   : > { %v867_v59 = vmul.f32 %v1556_v0, %v828_v48  ;;  %v868_v31 = vmul.f32 %v1556_v0, %v829_v53  ;;  %v865_v43 = vmul.f32 %v1556_v0, %v826_v29  ;;  %v866_v9 = vmul.f32 %v1556_v0, %v827_v37  ;;  %v234_v53 = vld [vmem:[%s2097_s3] sm:$0xff] }
 0x3c0   : > { %v863_v27 = vmul.f32 %v1556_v0, %v824_v21  ;;  %v864_v61 = vmul.f32 %v1556_v0, %v825_v52  ;;  %v861_v17 = vmul.f32 %v1556_v0, %v822_v14  ;;  %v862_v18 = vmul.f32 %v1556_v0, %v823_v20  ;;  %v435_v14 = vpop.permute.xlu1 %434  ;;  %v383_v20 = vpop.f32.mrf.mxu0  ;;  %1434 = vmatprep.mubr.msk.f32.mxu0 %vm266_vm0, %v234_v53 }
 0x3c1   : > { %v880_v10 = vpack.c.bf16 %v868_v31, %v867_v59  ;;  %v879_v12 = vpack.c.bf16 %v866_v9, %v865_v43  ;;  %v859_v24 = vmul.f32 %v1556_v0, %v1958_v63  ;;  %v860_v25 = vmul.f32 %v1556_v0, %v1963_v13 }
 0x3c2   : > { %v878_v46 = vpack.c.bf16 %v864_v61, %v863_v27  ;;  %v877_v22 = vpack.c.bf16 %v862_v18, %v861_v17  ;;  %v857_v21 = vmul.f32 %v1556_v0, %v1950_v57  ;;  %v858_v52 = vmul.f32 %v1556_v0, %v1955_v62  ;;  %v1362_v13 = vpop.f32.mrf.mxu0  ;;  %v235_v27 = vld [vmem:[%s2097_s3 + $0x8] sm:$0xff]  ;;  %v236_v61 = vld [vmem:[%s2097_s3 + $0x10] sm:$0xff] }
 0x3c3   : > { %1394 = vmatprep.subr.bf16.mxu1 %v880_v10  ;;  %v876_v28 = vpack.c.bf16 %v860_v25, %v859_v24  ;;  %v855_v30 = vmul.f32 %v1556_v0, %v1941_v50  ;;  %v856_v63 = vmul.f32 %v1556_v0, %v1947_v15  ;;  %v853_v33 = vmul.f32 %v1556_v0, %v1935_v47  ;;  %v239_v17 = vld [vmem:[%s2097_s3 + $0x28] sm:$0xff]  ;;  %v240_v18 = vld [vmem:[%s2097_s3 + $0x30] sm:$0xff]  ;;  %v962_v24 = vpop.permute.xlu0 %961 }
 0x3c4   : > { %1395 = vmatpush3.bf16.msra.mxu1 %v880_v10  ;;  %v875_v29 = vpack.c.bf16 %v858_v52, %v857_v21  ;;  %v854_v34 = vmul.f32 %v1556_v0, %v1938_v38  ;;  %v440_v57 = vpop.permute.xlu1 %439  ;;  %v393_v62 = vpop.f32.mrf.mxu0  ;;  %v454_v49 = vadd.f32 %v425_v16, %v383_v20  ;;  %v237_v16 = vld [vmem:[%s2097_s3 + $0x18] sm:$0xff] }
 0x3c5   : > { %1396 = vmatprep.subr.bf16.mxu1 %v879_v12  ;;  %v874_v32 = vpack.c.bf16 %v856_v63, %v855_v30  ;;  %v457_v45 = vadd.f32 %v1362_v13, %v440_v57  ;;  %v456_v15 = vadd.f32 %v435_v14, %v393_v62 }
 0x3c6   : > { %v873_v36 = vpack.c.bf16 %v854_v34, %v853_v33  ;;  %v1365_v56 = vpop.f32.mrf.mxu0  ;;  %v870_v37 = vpack.c.bf16 %v455_v44, %v454_v49 }
 0x3c7   : > { %v871_v48 = vpack.c.bf16 %v457_v45, %v456_v15  ;;  %v972_v35 = vpop.permute.xlu0 %971 }
 0x3c8   : > { %1397 = vmatpush3.bf16.msra.mxu1 %v879_v12  ;;  %v445_v50 = vpop.permute.xlu1 %444  ;;  %v403_v51 = vpop.f32.mrf.mxu0 }
 0x3c9   : > { %1398 = vmatprep.subr.bf16.mxu1 %v878_v46  ;;  %v458_v39 = vadd.f32 %v445_v50, %v403_v51 }
 0x3cc   : > { %1399 = vmatpush3.bf16.msra.mxu1 %v878_v46  ;;  %v450_v47 = vpop.permute.xlu1 %449  ;;  %v238_v46 = vld [vmem:[%s2097_s3 + $0x20] sm:$0xff] }
 0x3cd   : > { %1400 = vmatprep.subr.bf16.mxu1 %v877_v22  ;;  %v459_v38 = vadd.f32 %v1365_v56, %v450_v47 }
 0x3cf   : > { %v872_v54 = vpack.c.bf16 %v459_v38, %v458_v39 }
 0x3d0   : > { %1401 = vmatpush3.bf16.msra.mxu1 %v877_v22  ;;  %v241_v22 = vld [vmem:[%s2097_s3 + $0x38] sm:$0xff]  ;;  %v957_v25 = vpop.permute.xlu1 %956 }
 0x3d1   : > { %1402 = vmatprep.subr.bf16.mxu1 %v876_v28 }
 0x3d4   : > { %1403 = vmatpush3.bf16.msra.mxu1 %v876_v28  ;;  %v967_v21 = vpop.permute.xlu1 %966 }
 0x3d5   : > { %1404 = vmatprep.subr.bf16.mxu1 %v875_v29 }
 0x3d8   : > { %1405 = vmatpush3.bf16.msra.mxu1 %v875_v29 }
 0x3d9   : > { %1406 = vmatprep.subr.bf16.mxu1 %v874_v32 }
 0x3dc   : > { %1407 = vmatpush3.bf16.msra.mxu1 %v874_v32  ;;  %v982_v32 = vpop.permute.xlu0 %981 }
 0x3dd   : > { %1408 = vmatprep.subr.bf16.mxu1 %v873_v36 }
 0x3e0   : > { %1409 = vmatpush3.bf16.msra.mxu1 %v873_v36  ;;  %v977_v36 = vpop.permute.xlu1 %976 }
 0x3e3   : > { %1411 = vmatmul.mubr.bf16.vlgmr.msra.gmra.mxu1 %v870_v37  ;;  %v992_v37 = vpop.permute.xlu0 %991 }
 0x3e4   : > { %1414 = vmatprep.mubr.bf16.mxu1 %v871_v48  ;;  %v987_v38 = vpop.permute.xlu1 %986 }
 0x3eb   : > { %1415 = vmatmul.mubr.bf16.gmra.mxu1 %v872_v54 }
 0x4a3   : > { %v1412_v60 = vpop.f32.mrf.mxu1 }
 0x4a4   : > { %v948_v9 = vsub.f32 %v1728_v6, %v1412_v60 }
 0x4a5   : > { %v915_v40 = vpop.f32.mrf.mxu1 }
 0x4a6   : > { %v946_v12 = vsub.f32 %v1736_v8, %v915_v40 }
 0x4a7   : > { %v1413_v55 = vpop.f32.mrf.mxu1 }
 0x4a8   : > { %v949_v43 = vsub.f32 %v1724_v5, %v1413_v55 }
 0x4a9   : > { %v918_v11 = vpop.f32.mrf.mxu1 }
 0x4aa   : > { %v947_v10 = vsub.f32 %v1732_v7, %v918_v11 }
 0x4ab   : > { %v1416_v23 = vpop.f32.mrf.mxu1 }
 0x4ac   : > { %v952_v0 = vsub.f32 %v1712_v2, %v1416_v23 }
 0x4ad   : > { %v931_v41 = vpop.f32.mrf.mxu1 }
 0x4ae   : > { %v950_v31 = vsub.f32 %v1720_v4, %v931_v41 }
 0x4af   : > { %v1417_v58 = vpop.f32.mrf.mxu1 }
 0x4b0   : > { %v953_v42 = vsub.f32 %v1710_v1, %v1417_v58 }
 0x4b1   : > { %v934_v19 = vpop.f32.mrf.mxu1 }
 0x4b2   : > { %1418 = vmatprep.subr.mxu0 %v953_v42  ;;  %v951_v59 = vsub.f32 %v1716_v3, %v934_v19 }
 0x4b3   : > { %1419 = vmatpush3.msra.mxu0 %v953_v42 }
 0x4b4   : > { %1420 = vmatprep.subr.mxu0 %v952_v0 }
 0x4b5   : > { %1421 = vmatpush3.msra.mxu0 %v952_v0 }
 0x4b6   : > { %1422 = vmatprep.subr.mxu0 %v951_v59 }
 0x4b7   : > { %1423 = vmatpush3.msra.mxu0 %v951_v59 }
 0x4b8   : > { %1424 = vmatprep.subr.mxu0 %v950_v31 }
 0x4b9   : > { %1425 = vmatpush3.msra.mxu0 %v950_v31 }
 0x4ba   : > { %1426 = vmatprep.subr.mxu0 %v949_v43 }
 0x4bb   : > { %1427 = vmatpush3.msra.mxu0 %v949_v43 }
 0x4bc   : > { %1428 = vmatprep.subr.mxu0 %v948_v9 }
 0x4bd   : > { %1429 = vmatpush3.msra.mxu0 %v948_v9 }
 0x4be   : > { %1430 = vmatprep.subr.mxu0 %v947_v10 }
 0x4bf   : > { %1431 = vmatpush3.msra.mxu0 %v947_v10 }
 0x4c0   : > { %1432 = vmatprep.subr.mxu0 %v946_v12 }
 0x4c1   : > { %1433 = vmatpush3.msra.mxu0 %v946_v12 }
 0x4c2   : > { %1435 = vmatmul.mubr.msk.f32.vlgmr.msra.gmra.mxu0 %vm266_vm0, %v235_v27 }
 0x4c3   : > { %1437 = vmatprep.mubr.msk.f32.mxu0 %vm266_vm0, %v236_v61 }
 0x4c6   : > { %1438 = vmatmul.mubr.msk.f32.gmra.mxu0 %vm266_vm0, %v237_v16 }
 0x4c7   : > { %1440 = vmatprep.mubr.msk.f32.mxu0 %vm266_vm0, %v238_v46 }
 0x4ca   : > { %1441 = vmatmul.mubr.msk.f32.gmra.mxu0 %vm266_vm0, %v239_v17 }
 0x4cb   : > { %1443 = vmatprep.mubr.msk.f32.mxu0 %vm266_vm0, %v240_v18 }
 0x4ce   : > { %1444 = vmatmul.mubr.msk.f32.gmra.mxu0 %vm266_vm0, %v241_v22 }
 0x582   : > { %v1436_v26 = vpop.f32.mrf.mxu0 }
 0x583   : > { %v1090_v28 = vadd.f32 %v1436_v26, %v962_v24 }
 0x584   : > { %v1084_v52 = vpop.f32.mrf.mxu0 }
 0x585   : > { %v1124_v14 = vmax.f32 %v1090_v28, 0.0  ;;  %v1085_v20 = vadd.f32 %v1084_v52, %v957_v25 }
 0x586   : > { %v1439_v29 = vpop.f32.mrf.mxu0 }
 0x587   : > { %v1132_v30 = vadd.f32 %v1124_v14, %v1732_v7  ;;  %v1123_v63 = vmax.f32 %v1085_v20, 0.0  ;;  %v1100_v13 = vadd.f32 %v1439_v29, %v972_v35 }
 0x588   : > { %v1094_v33 = vpop.f32.mrf.mxu0 }
 0x589   : > { %1140 = vst [vmem:[%s2026_s16 + $0x8] sm:$0xff] %v1132_v30  ;;  %v1131_v34 = vadd.f32 %v1123_v63, %v1736_v8  ;;  %v1126_v57 = vmax.f32 %v1100_v13, 0.0  ;;  %v1095_v62 = vadd.f32 %v1094_v33, %v967_v21 }
 0x58a   : > { %v1442_v44 = vpop.f32.mrf.mxu0 }
 0x58b   : > { %1139 = vst [vmem:[%s2026_s16] sm:$0xff] %v1131_v34  ;;  %v1134_v7 = vadd.f32 %v1126_v57, %v1724_v5  ;;  %v1125_v49 = vmax.f32 %v1095_v62, 0.0  ;;  %v1110_v50 = vadd.f32 %v1442_v44, %v982_v32 }
 0x58c   : > { %v1104_v45 = vpop.f32.mrf.mxu0 }
 0x58d   : > { %1142 = vst [vmem:[%s2026_s16 + $0x18] sm:$0xff] %v1134_v7  ;;  %v1133_v15 = vadd.f32 %v1125_v49, %v1728_v6  ;;  %v1128_v56 = vmax.f32 %v1110_v50, 0.0  ;;  %v1105_v8 = vadd.f32 %v1104_v45, %v977_v36 }
 0x58e   : > { %v1445_v48 = vpop.f32.mrf.mxu0 }
 0x58f   : > { %1141 = vst [vmem:[%s2026_s16 + $0x10] sm:$0xff] %v1133_v15  ;;  %v1136_v51 = vadd.f32 %v1128_v56, %v1716_v3  ;;  %v1127_v47 = vmax.f32 %v1105_v8, 0.0  ;;  %v1120_v5 = vadd.f32 %v1445_v48, %v992_v37 }
 0x590   : > { %v1114_v39 = vpop.f32.mrf.mxu0 }
 0x591   : > { %1144 = vst [vmem:[%s2026_s16 + $0x28] sm:$0xff] %v1136_v51  ;;  %v1135_v54 = vadd.f32 %v1127_v47, %v1720_v4  ;;  %v1130_v6 = vmax.f32 %v1120_v5, 0.0  ;;  %v1115_v53 = vadd.f32 %v1114_v39, %v987_v38 }
 0x593   : > { %1143 = vst [vmem:[%s2026_s16 + $0x20] sm:$0xff] %v1135_v54  ;;  %v1138_v60 = vadd.f32 %v1130_v6, %v1710_v1  ;;  %v1129_v40 = vmax.f32 %v1115_v53, 0.0 }
 0x595   : > { %1146 = vst [vmem:[%s2026_s16 + $0x38] sm:$0xff] %v1138_v60  ;;  %v1137_v3 = vadd.f32 %v1129_v40, %v1712_v2 }
 0x597   : > { %1145 = vst [vmem:[%s2026_s16 + $0x30] sm:$0xff] %v1137_v3 }
 0x598   : > { %1570 = shalt.err (!%p1567_p3)
}
 0x599   : > { %s1571_s10 = scalar_lea.hbm %s2045_s30, 1024  ;;  %s1575_s13 = scalar_lea.hbm %s2099_s5, 2048 }
 0x59a   : > { %p1572_p4 = scmp.ne.s32.totalorder %s2045_s30, %s1571_s10  ;;  %p1576_p9 = scmp.lt.s32.totalorder %s2045_s30, %s2099_s5 }
 0x59b   : > { %p1577_p10 = scmp.lt.s32.totalorder %s1575_s13, %s1571_s10 }
 0x59c   : > { %p1573_p7 = pnand %p1572_p4, %p1691_p5 }
 0x59d   : > { %p1578_p11 = por %p1577_p10, %p1576_p9 }
 0x59e   : > { %p1574_p8 = pneg %p1573_p7 }
 0x5a0   : > { %p1579_p12 = pnand %p1578_p11, %p1574_p8 }
 0x5a2   : > { %1582 = shalt.err (!%p1579_p12)
}
 0x5a3   : > { %s1621_s16 = smov 128   ;;  %s1622_s17 = smov 8  }
 0x5a4   : > { %1446 = dma.vmem_to_hbm [thread:$0]  (%p1691_p5), %s2047_s23, 1024, %s2045_s30, %s2054_s22, %s1621_s16, %s1621_s16, %s1622_s17  }
 0x5a5 PF: > { %p1452_p13 = scmp.ge.s32.totalorder %s1617_s21, 2  ;;  %s1176_s25 = sand.u32 1, %s1605_s18  }
 0x5a6   : > { %s1177_s26 = scalar_lea.sflag [#allocation3], %s1176_s25 }
 0x5a7   : > { %p1449_p0 = pnand %p1452_p13, %p1695_p6 }
 0x5a9   : > { %p1450_p1 = pneg %p1449_p0 }
 0x5ab   : > { %1600 = dma.done.wait (%p1450_p1), %s1177_s26, 1024  }
 0x5ac   : > { %1602 = vsyncadd (%p1450_p1), %s1177_s26, 4294966272  ;;  %p15_p2 = scmp.ge.s32.totalorder %s1678_s24, 4   ;;  %s2102_s18 = smov %s1609_s19 }
 0x5ad   : > { %s2103_s19 = smov %s1613_s20  ;;  %s2104_s20 = smov %s1689_s27 }
 0x5ae   : > { %s2105_s21 = smov %s1678_s24  ;;  %17 = sbr.rel (!%p15_p2) target bundleno = 3 (0x3), region = 75 }
 0x5b3   :  { %1182 = vsyncpa [#allocation3], 1 }
 0x5b4   :  { %1184 = vsyncpa [#allocation3 + $0x1], 1 }

</bundles_post_ra>
